<compile_context>
chip_gen: v5e
topology: v5e:2x2
jax: 0.10.0
libtpu: 0.0.40
codegen_flags: <defaults>
</compile_context>

<pallas_src>
import functools
import math

import jax
import jax.numpy as jnp
from jax.experimental import pallas as pl
from jax.experimental.pallas import tpu as pltpu

BN_EPS = 1e-5


def _round_up(x, m):
    return ((x + m - 1) // m) * m


# --------------------------------------------------------------------------- #
# Kernel
# --------------------------------------------------------------------------- #
def _basic_block_kernel(x_ref, w1_ref, b1_ref, w2_ref, b2_ref, o_ref):
    """Fused: relu( bn2(fc2( relu(bn1(fc1(x))) )) + x )  with BN scale folded
    into the (pre-transposed) weights and BN shift passed as a (1, F) vector."""
    x = x_ref[...]
    # fc1 (+ folded bn1 scale) -> shift -> relu     (MXU + VPU, all in VMEM)
    h = jnp.dot(x, w1_ref[...], preferred_element_type=jnp.float32)
    h = jnp.maximum(h + b1_ref[...], 0.0)
    # fc2 (+ folded bn2 scale) -> shift -> residual -> relu
    y = jnp.dot(h.astype(w2_ref.dtype), w2_ref[...],
                preferred_element_type=jnp.float32)
    y = y + b2_ref[...] + x.astype(jnp.float32)
    o_ref[...] = jnp.maximum(y, 0.0).astype(o_ref.dtype)


# --------------------------------------------------------------------------- #
# Wrapper
# --------------------------------------------------------------------------- #
def basic_block_forward(x, w1_t, shift1, w2_t, shift2, *,
                        compute_dtype=jnp.float32, batch_tile=128):
    """Single-pallas_call fused BasicBlock forward.

    x:       (B, inplanes)
    w1_t:    (inplanes, planes)   fc1.weight.T * bn1_scale   (pre-folded)
    shift1:  (planes,)            bn1 shift
    w2_t:    (planes, inplanes)   fc2.weight.T * bn2_scale
    shift2:  (inplanes,)          bn2 shift
    """
    B, fin = x.shape
    planes = w1_t.shape[1]
    assert w1_t.shape[0] == fin and w2_t.shape == (planes, fin)

    # Lane-dense padding: features -> multiple of 128, batch tile -> mult of 8.
    fin_p = _round_up(fin, 128)
    pl_p = _round_up(planes, 128)
    tm = batch_tile if B >= batch_tile else _round_up(B, 8)
    b_p = _round_up(B, tm)

    itemsize = jnp.dtype(compute_dtype).itemsize
    xp = jnp.pad(x, ((0, b_p - B), (0, fin_p - fin))).astype(compute_dtype)
    w1p = jnp.pad(w1_t, ((0, fin_p - fin), (0, pl_p - planes))).astype(compute_dtype)
    w2p = jnp.pad(w2_t, ((0, pl_p - planes), (0, fin_p - fin))).astype(compute_dtype)
    b1p = jnp.pad(shift1, (0, pl_p - planes)).reshape(1, pl_p).astype(jnp.float32)
    b2p = jnp.pad(shift2, (0, fin_p - fin)).reshape(1, fin_p).astype(jnp.float32)

    # Advisory cost + explicit VMEM budget (re-derived, capped for v7x 64 MiB).
    flops = 2 * b_p * fin_p * pl_p * 2  # two matmuls
    bytes_accessed = (xp.size + w1p.size + w2p.size) * itemsize \
        + (b1p.size + b2p.size + b_p * fin_p) * 4
    cost = pl.CostEstimate(flops=flops, transcendentals=0,
                           bytes_accessed=bytes_accessed)
    vmem_needed = (
        2 * tm * fin_p * itemsize            # x tiles (double-buffered)
        + 2 * tm * fin_p * 4                 # output tiles
        + 2 * 2 * fin_p * pl_p * itemsize    # both weights (worst case 2-buf)
        + 2 * (pl_p + fin_p) * 4             # shift vectors
    )
    vmem_limit = int(min(max(2 * vmem_needed, 8 * 2**20), 64 * 2**20))

    out = pl.pallas_call(
        _basic_block_kernel,
        out_shape=jax.ShapeDtypeStruct((b_p, fin_p), jnp.float32),
        grid=(b_p // tm,),
        in_specs=[
            pl.BlockSpec((tm, fin_p), lambda i: (i, 0)),      # x batch tile
            pl.BlockSpec((fin_p, pl_p), lambda i: (0, 0)),    # w1 (resident)
            pl.BlockSpec((1, pl_p), lambda i: (0, 0)),        # shift1
            pl.BlockSpec((pl_p, fin_p), lambda i: (0, 0)),    # w2 (resident)
            pl.BlockSpec((1, fin_p), lambda i: (0, 0)),       # shift2
        ],
        out_specs=pl.BlockSpec((tm, fin_p), lambda i: (i, 0)),
        compiler_params=pltpu.CompilerParams(
            dimension_semantics=("parallel",),   # shards batch across TCs (v7x)
            vmem_limit_bytes=vmem_limit,
        ),
        cost_estimate=cost,
    )(xp, w1p, b1p, w2p, b2p)

    return out[:B, :fin]


# --------------------------------------------------------------------------- #
# Parameter init (PyTorch defaults) and BN folding
# --------------------------------------------------------------------------- #
def init_basic_block_params(key, inplanes, planes):
    k1, k2 = jax.random.split(key)
    bound1 = 1.0 / math.sqrt(inplanes)   # nn.Linear default kaiming_uniform(a=√5)
    bound2 = 1.0 / math.sqrt(planes)
    fc1_w = jax.random.uniform(k1, (planes, inplanes), jnp.float32, -bound1, bound1)
    fc2_w = jax.random.uniform(k2, (inplanes, planes), jnp.float32, -bound2, bound2)
    bn1 = dict(gamma=jnp.ones((planes,), jnp.float32),
               beta=jnp.zeros((planes,), jnp.float32),
               mean=jnp.zeros((planes,), jnp.float32),
               var=jnp.ones((planes,), jnp.float32))
    bn2 = dict(gamma=jnp.ones((inplanes,), jnp.float32),
               beta=jnp.zeros((inplanes,), jnp.float32),
               mean=jnp.zeros((inplanes,), jnp.float32),
               var=jnp.ones((inplanes,), jnp.float32))
    return dict(fc1_w=fc1_w, fc2_w=fc2_w, bn1=bn1, bn2=bn2)


def fold_bn_into_weights(params, eps=BN_EPS):
    """One-time prep: pre-transpose weights and fold BN eval scale into them."""
    s1 = params["bn1"]["gamma"] * jax.lax.rsqrt(params["bn1"]["var"] + eps)
    sh1 = params["bn1"]["beta"] - params["bn1"]["mean"] * s1
    s2 = params["bn2"]["gamma"] * jax.lax.rsqrt(params["bn2"]["var"] + eps)
    sh2 = params["bn2"]["beta"] - params["bn2"]["mean"] * s2
    w1_t = params["fc1_w"].T * s1[None, :]   # (inplanes, planes)
    w2_t = params["fc2_w"].T * s2[None, :]   # (planes, inplanes)
    return w1_t, sh1, w2_t, sh2


def basic_block_reference(params, x, eps=BN_EPS):
    """Pure-JAX eval-mode reference (same semantics as the PyTorch module)."""
    bn1, bn2 = params["bn1"], params["bn2"]
    h = x @ params["fc1_w"].T
    h = (h - bn1["mean"]) * jax.lax.rsqrt(bn1["var"] + eps) * bn1["gamma"] + bn1["beta"]
    h = jnp.maximum(h, 0.0)
    y = h @ params["fc2_w"].T
    y = (y - bn2["mean"]) * jax.lax.rsqrt(bn2["var"] + eps) * bn2["gamma"] + bn2["beta"]
    return jnp.maximum(y + x, 0.0)


# --------------------------------------------------------------------------- #
# Demo
# --------------------------------------------------------------------------- #
if __name__ == "__main__":
    batch = 8
    inplanes = 32
    planes = 64

    key = jax.random.PRNGKey(0)
    pkey, xkey = jax.random.split(key)

    params = init_basic_block_params(pkey, inplanes, planes)
    x = jax.random.normal(xkey, (batch, inplanes), jnp.float32)

    # One-time param prep (pre-transpose + BN fold), then a single fused kernel.
    w1_t, sh1, w2_t, sh2 = fold_bn_into_weights(params)
    fwd = jax.jit(functools.partial(basic_block_forward,
                                    w1_t=w1_t, shift1=sh1,
                                    w2_t=w2_t, shift2=sh2))

    out = jax.block_until_ready(fwd(x))
    assert out.shape == (batch, inplanes)

    ref = jax.block_until_ready(basic_block_reference(params, x))
    max_err = float(jnp.max(jnp.abs(out - ref)))
    assert jnp.allclose(out, ref, atol=1e-2, rtol=1e-2), f"max_err={max_err}"

    print("KERNEL_OK")
</pallas_src>

<mosaic_0001>
module attributes {stable_mosaic.version = 11 : i64} {
  func.func @_basic_block_kernel(%arg0: i32, %arg1: memref<8x128xf32, #tpu.memory_space<vmem>>, %arg2: memref<128x128xf32, #tpu.memory_space<vmem>>, %arg3: memref<1x128xf32, #tpu.memory_space<vmem>>, %arg4: memref<128x128xf32, #tpu.memory_space<vmem>>, %arg5: memref<1x128xf32, #tpu.memory_space<vmem>>, %arg6: memref<8x128xf32, #tpu.memory_space<vmem>>) attributes {dimension_semantics = [#tpu.dimension_semantics<parallel>], iteration_bounds = array<i64: 1>, scalar_prefetch = 0 : i64, scratch_operands = 0 : i64, tpu.core_type = #tpu.core_type<tc>, window_params = [{transform_indices = @transform_0, window_bounds = array<i64: 8, 128>}, {pipeline_mode = #tpu.pipeline_mode<synchronous>, transform_indices = @transform_1, window_bounds = array<i64: 128, 128>}, {pipeline_mode = #tpu.pipeline_mode<synchronous>, transform_indices = @transform_2, window_bounds = array<i64: 1, 128>}, {pipeline_mode = #tpu.pipeline_mode<synchronous>, transform_indices = @transform_3, window_bounds = array<i64: 128, 128>}, {pipeline_mode = #tpu.pipeline_mode<synchronous>, transform_indices = @transform_4, window_bounds = array<i64: 1, 128>}, {transform_indices = @transform_5, window_bounds = array<i64: 8, 128>}]} {
    %c0 = arith.constant 0 : index
    %c0_0 = arith.constant 0 : index
    %0 = vector.load %arg1[%c0, %c0_0] : memref<8x128xf32, #tpu.memory_space<vmem>>, vector<8x128xf32>
    %c0_1 = arith.constant 0 : index
    %c0_2 = arith.constant 0 : index
    %1 = vector.load %arg2[%c0_1, %c0_2] : memref<128x128xf32, #tpu.memory_space<vmem>>, vector<128x128xf32>
    %cst = arith.constant dense<0.000000e+00> : vector<8x128xf32>
    %2 = tpu.matmul %0, %1, %cst {dimension_numbers = #tpu.dot_dimension_numbers<[1], [0], [0], [1], [0, 0, 1, 1], [], []>} : vector<8x128xf32>, vector<128x128xf32>, vector<8x128xf32> -> vector<8x128xf32>
    %c0_3 = arith.constant 0 : index
    %c0_4 = arith.constant 0 : index
    %3 = vector.load %arg3[%c0_3, %c0_4] : memref<1x128xf32, #tpu.memory_space<vmem>>, vector<1x128xf32>
    %4 = vector.broadcast %3 : vector<1x128xf32> to vector<8x128xf32>
    %5 = arith.addf %2, %4 : vector<8x128xf32>
    %cst_5 = arith.constant 0.000000e+00 : f32
    %6 = vector.broadcast %cst_5 : f32 to vector<8x128xf32>
    %7 = arith.maximumf %5, %6 : vector<8x128xf32>
    %c0_6 = arith.constant 0 : index
    %c0_7 = arith.constant 0 : index
    %8 = vector.load %arg4[%c0_6, %c0_7] : memref<128x128xf32, #tpu.memory_space<vmem>>, vector<128x128xf32>
    %cst_8 = arith.constant dense<0.000000e+00> : vector<8x128xf32>
    %9 = tpu.matmul %7, %8, %cst_8 {dimension_numbers = #tpu.dot_dimension_numbers<[1], [0], [0], [1], [0, 0, 1, 1], [], []>} : vector<8x128xf32>, vector<128x128xf32>, vector<8x128xf32> -> vector<8x128xf32>
    %c0_9 = arith.constant 0 : index
    %c0_10 = arith.constant 0 : index
    %10 = vector.load %arg5[%c0_9, %c0_10] : memref<1x128xf32, #tpu.memory_space<vmem>>, vector<1x128xf32>
    %11 = vector.broadcast %10 : vector<1x128xf32> to vector<8x128xf32>
    %12 = arith.addf %9, %11 : vector<8x128xf32>
    %13 = arith.addf %12, %0 : vector<8x128xf32>
    %cst_11 = arith.constant 0.000000e+00 : f32
    %14 = vector.broadcast %cst_11 : f32 to vector<8x128xf32>
    %15 = arith.maximumf %13, %14 : vector<8x128xf32>
    %c0_12 = arith.constant 0 : index
    %c0_13 = arith.constant 0 : index
    %16 = vector.load %arg6[%c0_12, %c0_13] : memref<8x128xf32, #tpu.memory_space<vmem>>, vector<8x128xf32>
    tpu.vector_store %arg6[%c0_12, %c0_13], %15 {strides = array<i32>} : memref<8x128xf32, #tpu.memory_space<vmem>>, vector<8x128xf32>,
    return
  }
  func.func @transform_0(%arg0: i32) -> (i32, i32) {
    %c0_i32 = arith.constant 0 : i32
    %c0_i32_0 = arith.constant 0 : i32
    return %arg0, %c0_i32 : i32, i32
  }
  func.func @transform_1(%arg0: i32) -> (i32, i32) {
    %c0_i32 = arith.constant 0 : i32
    %c0_i32_0 = arith.constant 0 : i32
    %c0_i32_1 = arith.constant 0 : i32
    return %c0_i32, %c0_i32_0 : i32, i32
  }
  func.func @transform_2(%arg0: i32) -> (i32, i32) {
    %c0_i32 = arith.constant 0 : i32
    %c0_i32_0 = arith.constant 0 : i32
    %c0_i32_1 = arith.constant 0 : i32
    return %c0_i32, %c0_i32_0 : i32, i32
  }
  func.func @transform_3(%arg0: i32) -> (i32, i32) {
    %c0_i32 = arith.constant 0 : i32
    %c0_i32_0 = arith.constant 0 : i32
    %c0_i32_1 = arith.constant 0 : i32
    return %c0_i32, %c0_i32_0 : i32, i32
  }
  func.func @transform_4(%arg0: i32) -> (i32, i32) {
    %c0_i32 = arith.constant 0 : i32
    %c0_i32_0 = arith.constant 0 : i32
    %c0_i32_1 = arith.constant 0 : i32
    return %c0_i32, %c0_i32_0 : i32, i32
  }
  func.func @transform_5(%arg0: i32) -> (i32, i32) {
    %c0_i32 = arith.constant 0 : i32
    %c0_i32_0 = arith.constant 0 : i32
    return %arg0, %c0_i32 : i32, i32
  }
}

</mosaic_0001>

<bundles_post_ra>
// kernel: basic_block_forward.1
= control target key start
LH: loop header
LB: loop body
LE: loop exit
PB: predicated region body
PF: predicated region fallthrough
CT: control target
= control target key end

     0   :  { %10 = vsyncpa [#allocation3], 0  ;;  %s294_s0 = inlined_call_operand.vmem [shape: f32[8,128], index: 0, kind: input, shape index: {}]   ;;  %s295_s1 = inlined_call_operand.hbm [shape: f32[128,128], index: 1, kind: input, shape index: {}]   ;;  %s296_s2 = inlined_call_operand.vmem [shape: f32[1,128], index: 2, kind: input, shape index: {}]   ;;  %s297_s3 = inlined_call_operand.hbm [shape: f32[128,128], index: 3, kind: input, shape index: {}]   ;;  %s298_s4 = inlined_call_operand.vmem [shape: f32[1,128], index: 4, kind: input, shape index: {}]   ;;  %s299_s5 = inlined_call_operand.hbm [shape: f32[8,128], index: 5, kind: output, shape index: {}]  }
   0x1   :  { %11 = vsyncpa [#allocation6], 0 }
   0x2   :  { %12 = vsyncpa [#allocation4], 0  ;;  %s19_s20 = sshll.u32 %s295_s1, 4  ;;  %s241_s21 = smov [#allocation2]   ;;  %s20_s20 = int_to_ptr.hbm [resolvable:$true] %s19_s20 }
   0x3   :  { %s21_s22 = sshll.u32 %s241_s21, 4  ;;  %s34_s25 = sshll.u32 %s297_s3, 4  ;;  %s22_s22 = int_to_ptr.vmem [resolvable:$true] %s21_s22  ;;  %s35_s25 = int_to_ptr.hbm [resolvable:$true] %s34_s25 }
   0x4   :  { %s242_s26 = smov 128   ;;  %s243_s27 = smov 8  }
   0x5   :  { %27 = dma.hbm_to_vmem [thread:$0]  %s20_s20, 2048, %s22_s22, [#allocation3], %s242_s26, %s242_s26, %s243_s27  }
   0x6   :  { %s244_s28 = smov [#allocation5]  }
   0x7   :  { %s36_s29 = sshll.u32 %s244_s28, 4  ;;  %s37_s29 = int_to_ptr.vmem [resolvable:$true] %s36_s29 }
   0x8   :  { %42 = dma.hbm_to_vmem [thread:$0]  %s35_s25, 2048, %s37_s29, [#allocation6], %s242_s26, %s242_s26, %s243_s27  }
   0x9   :  { %235 = dma.done.wait [#allocation3], 2048  }
   0xa   :  { %236 = vsyncadd [#allocation3], 4294965248 }
   0xb   :  { %237 = dma.done.wait [#allocation6], 2048  }
   0xc   :  { %238 = vsyncadd [#allocation6], 4294965248  ;;  %v69_v0 = vld [vmem:[#allocation2 + $0x78] sm:$0xff]  ;;  %v68_v1 = vld [vmem:[#allocation2 + $0x70] sm:$0xff]  ;;  %s145_s12 = sshll.u32 %s299_s5, 4  ;;  %s146_s12 = int_to_ptr.hbm [resolvable:$true] %s145_s12 }
   0xd   :  { %74 = vmatpush.msra.mxu0 %v69_v0  ;;  %v67_v2 = vld [vmem:[#allocation2 + $0x68] sm:$0xff]  ;;  %v66_v3 = vld [vmem:[#allocation2 + $0x60] sm:$0xff]  ;;  %v110_v4 = vld [vmem:[#allocation5 + $0x78] sm:$0xff] }
   0xe   :  { %v65_v5 = vld [vmem:[#allocation2 + $0x58] sm:$0xff]  ;;  %115 = vmatpush.msra.mxu1 %v110_v4  ;;  %v109_v6 = vld [vmem:[#allocation5 + $0x70] sm:$0xff]  ;;  %v108_v7 = vld [vmem:[#allocation5 + $0x68] sm:$0xff] }
   0xf   :  { %75 = vmatpush.msra.mxu0 %v68_v1  ;;  %v64_v8 = vld [vmem:[#allocation2 + $0x50] sm:$0xff]  ;;  %v107_v9 = vld [vmem:[#allocation5 + $0x60] sm:$0xff]  ;;  %v63_v10 = vld [vmem:[#allocation2 + $0x48] sm:$0xff] }
  0x10   :  { %116 = vmatpush.msra.mxu1 %v109_v6  ;;  %v106_v11 = vld [vmem:[#allocation5 + $0x58] sm:$0xff]  ;;  %v62_v12 = vld [vmem:[#allocation2 + $0x40] sm:$0xff]  ;;  %v105_v13 = vld [vmem:[#allocation5 + $0x50] sm:$0xff] }
  0x11   :  { %76 = vmatpush.msra.mxu0 %v67_v2  ;;  %v61_v14 = vld [vmem:[#allocation2 + $0x38] sm:$0xff]  ;;  %v104_v15 = vld [vmem:[#allocation5 + $0x48] sm:$0xff]  ;;  %v60_v16 = vld [vmem:[#allocation2 + $0x30] sm:$0xff] }
  0x12   :  { %117 = vmatpush.msra.mxu1 %v108_v7  ;;  %v103_v17 = vld [vmem:[#allocation5 + $0x40] sm:$0xff]  ;;  %v59_v18 = vld [vmem:[#allocation2 + $0x28] sm:$0xff]  ;;  %v102_v19 = vld [vmem:[#allocation5 + $0x38] sm:$0xff] }
  0x13   :  { %77 = vmatpush.msra.mxu0 %v66_v3  ;;  %v58_v20 = vld [vmem:[#allocation2 + $0x20] sm:$0xff]  ;;  %v101_v21 = vld [vmem:[#allocation5 + $0x30] sm:$0xff]  ;;  %v57_v22 = vld [vmem:[#allocation2 + $0x18] sm:$0xff] }
  0x14   :  { %118 = vmatpush.msra.mxu1 %v107_v9  ;;  %v100_v23 = vld [vmem:[#allocation5 + $0x28] sm:$0xff]  ;;  %v56_v24 = vld [vmem:[#allocation2 + $0x10] sm:$0xff]  ;;  %v99_v25 = vld [vmem:[#allocation5 + $0x20] sm:$0xff] }
  0x15   :  { %78 = vmatpush.msra.mxu0 %v65_v5  ;;  %v55_v26 = vld [vmem:[#allocation2 + $0x8] sm:$0xff]  ;;  %v98_v27 = vld [vmem:[#allocation5 + $0x18] sm:$0xff]  ;;  %v54_v28 = vld [vmem:[#allocation2] sm:$0xff] }
  0x16   :  { %119 = vmatpush.msra.mxu1 %v106_v11  ;;  %v53_v29 = vld [vmem:[%s294_s0] sm:$0xff]  ;;  %v97_v30 = vld [vmem:[#allocation5 + $0x10] sm:$0xff]  ;;  %v96_v31 = vld [vmem:[#allocation5 + $0x8] sm:$0xff]  ;;  %s245_s0 = smov [#allocation7]  }
  0x17   :  { %79 = vmatpush.msra.mxu0 %v64_v8  ;;  %v95_v32 = vld [vmem:[#allocation5] sm:$0xff]  ;;  %s143_s9 = sshll.u32 %s245_s0, 4  ;;  %s144_s9 = int_to_ptr.vmem [resolvable:$true] %s143_s9 }
  0x18   :  { %120 = vmatpush.msra.mxu1 %v105_v13  ;;  %v161_v33 = vld [vmem:[%s296_s2] ss:$0 sm:$0xff] }
  0x19   :  { %80 = vmatpush.msra.mxu0 %v63_v10  ;;  %v162_v37 = vld [vmem:[%s298_s4] ss:$0 sm:$0xff] }
  0x1a   :  { %121 = vmatpush.msra.mxu1 %v104_v15 }
  0x1b   :  { %81 = vmatpush.msra.mxu0 %v62_v12 }
  0x1c   :  { %122 = vmatpush.msra.mxu1 %v103_v17 }
  0x1d   :  { %82 = vmatpush.msra.mxu0 %v61_v14 }
  0x1e   :  { %123 = vmatpush.msra.mxu1 %v102_v19 }
  0x1f   :  { %83 = vmatpush.msra.mxu0 %v60_v16 }
  0x20   :  { %124 = vmatpush.msra.mxu1 %v101_v21 }
  0x21   :  { %84 = vmatpush.msra.mxu0 %v59_v18 }
  0x22   :  { %125 = vmatpush.msra.mxu1 %v100_v23 }
  0x23   :  { %85 = vmatpush.msra.mxu0 %v58_v20 }
  0x24   :  { %126 = vmatpush.msra.mxu1 %v99_v25 }
  0x25   :  { %86 = vmatpush.msra.mxu0 %v57_v22 }
  0x26   :  { %127 = vmatpush.msra.mxu1 %v98_v27 }
  0x27   :  { %87 = vmatpush.msra.mxu0 %v56_v24 }
  0x28   :  { %128 = vmatpush.msra.mxu1 %v97_v30 }
  0x29   :  { %88 = vmatpush.msra.mxu0 %v55_v26 }
  0x2a   :  { %129 = vmatpush.msra.mxu1 %v96_v31 }
  0x2b   :  { %89 = vmatpush.msra.mxu0 %v54_v28 }
  0x2c   :  { %90 = vmatmul.f32.vlgmr.msra.gmra.mxu0 %v53_v29  ;;  %130 = vmatpush.msra.mxu1 %v95_v32 }
  0xa9   :  { %v91_v34 = vpop.f32.mrf.mxu0 }
  0xaa   :  { %v92_v35 = vadd.f32 %v161_v33, %v91_v34 }
  0xac   :  { %v94_v36 = vmax.f32 %v92_v35, 0.0 }
  0xae   :  { %131 = vmatmul.f32.vlgmr.msra.gmra.mxu1 %v94_v36 }
 0x12b   :  { %v132_v38 = vpop.f32.mrf.mxu1 }
 0x12c   :  { %v133_v39 = vadd.f32 %v162_v37, %v132_v38 }
 0x12e   :  { %v135_v40 = vadd.f32 %v133_v39, %v53_v29 }
 0x130   :  { %v136_v41 = vmax.f32 %v135_v40, 0.0 }
 0x132   :  { %137 = vst [vmem:[#allocation7] sm:$0xff] %v136_v41 }
 0x133   :  { %148 = dma.vmem_to_hbm [thread:$0]  %s144_s9, 128, %s146_s12, [#allocation4]  }
 0x134   :  { %239 = dma.done.wait [#allocation4], 128  }
 0x135   :  { %240 = vsyncadd [#allocation4], 4294967168 }
 0x136   :  { %153 = vsyncpa [#allocation3], 1 }
 0x137   :  { %154 = vsyncpa [#allocation6], 1 }
 0x138   :  { %155 = vsyncpa [#allocation4], 1 }

</bundles_post_ra>
